<compile_context>
chip_gen: v6e
topology: v6e:2x2x1
jax: 0.10.0
libtpu: 0.0.40
codegen_flags: <defaults>
</compile_context>

<pallas_src>
import functools

import jax
import jax.numpy as jnp
from jax.experimental import pallas as pl
from jax.experimental.pallas import tpu as pltpu


def _round_up(x, m):
    return ((x + m - 1) // m) * m


# ----------------------------------------------------------------------------
# Pallas kernels
# ----------------------------------------------------------------------------
def _box_head_kernel(x_ref, w_ref, b_ref, o_ref):
    """Fused cls_score + bbox_pred: o = x @ [Wcls|Wbox] + [bcls|bbox].

    x/w are bf16 (MXU native), accumulation f32, bias epilogue f32.
    """
    acc = jnp.dot(x_ref[...], w_ref[...], preferred_element_type=jnp.float32)
    o_ref[...] = (acc + b_ref[...]).astype(o_ref.dtype)


def _mask_head_kernel(x_ref, w1_ref, b1_ref, w2_ref, b2_ref, o_ref, *, chid):
    """Fused MaskRCNNPredictor: ConvTranspose2d(k=2,s=2) -> ReLU -> Conv2d(1x1).

    x_ref : (tile_m, cin)        bf16   flattened (r, y, x) ROI features
    w1_ref: (cin, 4*chid)        bf16   deconv weights packed as (dy, dx, chid)
    b1_ref: (1, 4*chid)          f32
    w2_ref: (chid, nc_slot)      bf16   1x1-conv (logits) weights, lane-padded
    b2_ref: (1, nc_slot)         f32
    o_ref : (tile_m, 4*nc_slot)  f32    lane-dense (4*nc_slot is a mult. of 128)
    """
    # deconv as one channel matmul producing all 4 (dy, dx) sub-pixels at once
    h = jnp.dot(x_ref[...], w1_ref[...], preferred_element_type=jnp.float32)
    h = jnp.maximum(h + b1_ref[...], 0.0)          # f32 bias + ReLU (VPU)
    # 1x1 conv: contract over chid only, once per sub-pixel block.
    outs = []
    for i in range(4):
        hi = h[:, i * chid:(i + 1) * chid].astype(jnp.bfloat16)
        oi = jnp.dot(hi, w2_ref[...], preferred_element_type=jnp.float32)
        outs.append(oi + b2_ref[...])
    o_ref[...] = jnp.concatenate(outs, axis=-1).astype(o_ref.dtype)


# ----------------------------------------------------------------------------
# pallas_call wrappers (M-tiled, parallel grid, lane-dense outputs)
# ----------------------------------------------------------------------------
def box_head_matmul(x_bf16, w_bf16, b_f32, *, tile_m=128):
    m, k = x_bf16.shape
    n = w_bf16.shape[1]                                   # already padded to 128
    tile_m = min(tile_m, _round_up(m, 8))
    m_pad = _round_up(m, tile_m)
    if m_pad != m:
        x_bf16 = jnp.pad(x_bf16, ((0, m_pad - m), (0, 0)))
    cost = pl.CostEstimate(
        flops=2 * m_pad * k * n,
        transcendentals=0,
        bytes_accessed=m_pad * k * 2 + k * n * 2 + n * 4 + m_pad * n * 4,
    )
    out = pl.pallas_call(
        _box_head_kernel,
        out_shape=jax.ShapeDtypeStruct((m_pad, n), jnp.float32),
        grid=(m_pad // tile_m,),
        in_specs=[
            pl.BlockSpec((tile_m, k), lambda i: (i, 0)),
            pl.BlockSpec((k, n), lambda i: (0, 0)),
            pl.BlockSpec((1, n), lambda i: (0, 0)),
        ],
        out_specs=pl.BlockSpec((tile_m, n), lambda i: (i, 0)),
        compiler_params=pltpu.CompilerParams(dimension_semantics=("parallel",)),
        cost_estimate=cost,
    )(x_bf16, w_bf16, b_f32)
    return out[:m]


def mask_head_fused(x_bf16, w1_bf16, b1_f32, w2_bf16, b2_f32, *, chid, tile_m=128):
    # NOTE: on v7x (64 MiB VMEM) halve tile_m (or keep bf16) at real head sizes.
    m, cin = x_bf16.shape
    n1 = w1_bf16.shape[1]                                 # 4 * chid
    nc_slot = w2_bf16.shape[1]
    n_out = 4 * nc_slot                                   # multiple of 128
    tile_m = min(tile_m, _round_up(m, 8))
    m_pad = _round_up(m, tile_m)
    if m_pad != m:
        x_bf16 = jnp.pad(x_bf16, ((0, m_pad - m), (0, 0)))
    cost = pl.CostEstimate(
        flops=2 * m_pad * cin * n1 + 4 * 2 * m_pad * chid * nc_slot,
        transcendentals=0,
        bytes_accessed=(m_pad * cin * 2 + cin * n1 * 2 + n1 * 4
                        + chid * nc_slot * 2 + nc_slot * 4 + m_pad * n_out * 4),
    )
    kernel = functools.partial(_mask_head_kernel, chid=chid)
    out = pl.pallas_call(
        kernel,
        out_shape=jax.ShapeDtypeStruct((m_pad, n_out), jnp.float32),
        grid=(m_pad // tile_m,),
        in_specs=[
            pl.BlockSpec((tile_m, cin), lambda i: (i, 0)),
            pl.BlockSpec((cin, n1), lambda i: (0, 0)),
            pl.BlockSpec((1, n1), lambda i: (0, 0)),
            pl.BlockSpec((chid, nc_slot), lambda i: (0, 0)),
            pl.BlockSpec((1, nc_slot), lambda i: (0, 0)),
        ],
        out_specs=pl.BlockSpec((tile_m, n_out), lambda i: (i, 0)),
        compiler_params=pltpu.CompilerParams(dimension_semantics=("parallel",)),
        cost_estimate=cost,
    )(x_bf16, w1_bf16, b1_f32, w2_bf16, b2_f32)
    return out[:m]


# ----------------------------------------------------------------------------
# One-time parameter repacking (hoisted out of the forward path)
# ----------------------------------------------------------------------------
def preprocess_params(params, num_classes):
    cin, chid = params["deconv_w"].shape[0], params["deconv_w"].shape[1]
    # --- box head: concat cls + bbox along N, pad lanes to a multiple of 128 ---
    w_cat = jnp.concatenate([params["cls_w"], params["bbox_w"]], axis=1)  # (K, 5*NC)
    b_cat = jnp.concatenate([params["cls_b"], params["bbox_b"]], axis=0)
    n_box = w_cat.shape[1]
    n_box_pad = _round_up(n_box, 128)
    w_cat = jnp.pad(w_cat, ((0, 0), (0, n_box_pad - n_box)))
    b_cat = jnp.pad(b_cat, (0, n_box_pad - n_box))
    # --- mask head ---
    # ConvTranspose2d(k=2, s=2): out[r,2y+dy,2x+dx,co] = sum_ci in[r,y,x,ci]*W[ci,co,dy,dx]+b
    # pack columns as ((dy*2+dx)*chid + co)
    w1 = jnp.transpose(params["deconv_w"], (0, 2, 3, 1)).reshape(cin, 4 * chid)
    b1 = jnp.tile(params["deconv_b"], (4,))
    nc_slot = _round_up(num_classes, 32)                  # 4*nc_slot is a multiple of 128
    w2 = jnp.pad(params["logits_w"], ((0, 0), (0, nc_slot - num_classes)))
    b2 = jnp.pad(params["logits_b"], (0, nc_slot - num_classes))
    return {
        "box_w": w_cat.astype(jnp.bfloat16),
        "box_b": b_cat.reshape(1, n_box_pad).astype(jnp.float32),
        "deconv_w": w1.astype(jnp.bfloat16),
        "deconv_b": b1.reshape(1, 4 * chid).astype(jnp.float32),
        "logits_w": w2.astype(jnp.bfloat16),
        "logits_b": b2.reshape(1, nc_slot).astype(jnp.float32),
    }


# ----------------------------------------------------------------------------
# Heads (the modules replaced inside MaskRCNNForLayoutAnalysis.__init__)
# ----------------------------------------------------------------------------
def fast_rcnn_predictor(box_features, pp, num_classes):
    if box_features.ndim == 4:
        box_features = box_features.reshape(box_features.shape[0], -1)
    out = box_head_matmul(box_features.astype(jnp.bfloat16), pp["box_w"], pp["box_b"])
    scores = out[:, :num_classes]
    bbox_deltas = out[:, num_classes:5 * num_classes]
    return scores, bbox_deltas


def mask_rcnn_predictor(mask_features_nhwc, pp, num_classes):
    r, h, w, cin = mask_features_nhwc.shape
    chid = pp["deconv_w"].shape[1] // 4
    nc_slot = pp["logits_w"].shape[1]
    x = mask_features_nhwc.reshape(r * h * w, cin).astype(jnp.bfloat16)
    out = mask_head_fused(x, pp["deconv_w"], pp["deconv_b"],
                          pp["logits_w"], pp["logits_b"], chid=chid)
    # spatial unpack on the small (num_classes-wide) result only
    out = out.reshape(r, h, w, 2, 2, nc_slot)[..., :num_classes]   # (r,y,x,dy,dx,c)
    out = jnp.transpose(out, (0, 1, 3, 2, 4, 5)).reshape(r, 2 * h, 2 * w, num_classes)
    return jnp.transpose(out, (0, 3, 1, 2))                        # NCHW like PyTorch


@functools.partial(jax.jit, static_argnames=("num_classes",))
def maskrcnn_heads_forward(box_features, mask_features_nhwc, pp, *, num_classes):
    scores, bbox_deltas = fast_rcnn_predictor(box_features, pp, num_classes)
    mask_logits = mask_rcnn_predictor(mask_features_nhwc, pp, num_classes)
    return {"scores": scores, "bbox_deltas": bbox_deltas, "mask_logits": mask_logits}


# ----------------------------------------------------------------------------
# Pure-JAX f32 reference (for correctness check)
# ----------------------------------------------------------------------------
def reference_forward(box_features, mask_features_nhwc, params):
    scores = box_features @ params["cls_w"] + params["cls_b"]
    bbox = box_features @ params["bbox_w"] + params["bbox_b"]

    wt, bt = params["deconv_w"], params["deconv_b"]
    up = jnp.einsum("ryxi,iodk->rydxko", mask_features_nhwc, wt)
    r, h, _, w, _, chid = up.shape
    up = up.reshape(r, 2 * h, 2 * w, chid) + bt
    up = jnp.maximum(up, 0.0)
    logits = jnp.einsum("rhwc,cn->rhwn", up, params["logits_w"]) + params["logits_b"]
    return {
        "scores": scores,
        "bbox_deltas": bbox,
        "mask_logits": jnp.transpose(logits, (0, 3, 1, 2)),
    }


# ----------------------------------------------------------------------------
# Deterministic parameter init (shapes scaled down from the real model:
# box in_features 1024->32, mask in_channels 256->16, hidden 256->32, 14x14->8x8)
# ----------------------------------------------------------------------------
def init_params(key, box_in, mask_cin, hidden, num_classes):
    ks = jax.random.split(key, 8)
    s = 0.05
    return {
        "cls_w": s * jax.random.normal(ks[0], (box_in, num_classes), jnp.float32),
        "cls_b": s * jax.random.normal(ks[1], (num_classes,), jnp.float32),
        "bbox_w": s * jax.random.normal(ks[2], (box_in, 4 * num_classes), jnp.float32),
        "bbox_b": s * jax.random.normal(ks[3], (4 * num_classes,), jnp.float32),
        "deconv_w": s * jax.random.normal(ks[4], (mask_cin, hidden, 2, 2), jnp.float32),
        "deconv_b": s * jax.random.normal(ks[5], (hidden,), jnp.float32),
        "logits_w": s * jax.random.normal(ks[6], (hidden, num_classes), jnp.float32),
        "logits_b": s * jax.random.normal(ks[7], (num_classes,), jnp.float32),
    }


if __name__ == "__main__":
    num_classes = 10     # as in MaskRCNNForLayoutAnalysis(num_classes=10)
    box_in = 32          # stands in for 1024 (FastRCNNPredictor in_features)
    mask_cin = 16        # stands in for 256  (MaskRCNNPredictor in_channels)
    hidden = 32          # stands in for 256  (hidden_layer)
    n_rois = 8
    hm = 8               # stands in for 14x14 mask-head ROI feature size

    key = jax.random.PRNGKey(0)
    k_img, k_box, k_mask, k_param = jax.random.split(key, 4)

    # The module's real input: a batch/list of NCHW images.
    images = jax.random.normal(k_img, (2, 3, 16, 16), jnp.float32)
    # TODO(synk): ResNet50-FPN backbone, RPN, RoIAlign, image transform and NMS
    # are not translatable to a single Pallas kernel; ROI-pooled features are
    # synthesized deterministically instead.
    box_features = jax.random.normal(k_box, (n_rois, box_in), jnp.float32)
    mask_features = jax.random.normal(k_mask, (n_rois // 2, hm, hm, mask_cin), jnp.float32)

    params = init_params(k_param, box_in, mask_cin, hidden, num_classes)
    pp = preprocess_params(params, num_classes)      # one-time weight repacking

    out = maskrcnn_heads_forward(box_features, mask_features, pp, num_classes=num_classes)
    out = jax.tree_util.tree_map(jax.block_until_ready, out)

    ref = reference_forward(box_features, mask_features, params)
    for name in ("scores", "bbox_deltas", "mask_logits"):
        assert out[name].shape == ref[name].shape, (name, out[name].shape, ref[name].shape)
        # bf16 MXU inputs (f32 accumulation) -> loosened tolerance vs f32 reference
        assert jnp.allclose(out[name], ref[name], atol=1e-2, rtol=1e-2), name

    print("KERNEL_OK")
</pallas_src>

<mosaic_0001>
module attributes {stable_mosaic.version = 11 : i64} {
  func.func @_box_head_kernel(%arg0: i32, %arg1: memref<8x32xbf16, #tpu.memory_space<vmem>>, %arg2: memref<32x128xbf16, #tpu.memory_space<vmem>>, %arg3: memref<1x128xf32, #tpu.memory_space<vmem>>, %arg4: memref<8x128xf32, #tpu.memory_space<vmem>>) attributes {dimension_semantics = [#tpu.dimension_semantics<parallel>], iteration_bounds = array<i64: 1>, scalar_prefetch = 0 : i64, scratch_operands = 0 : i64, tpu.core_type = #tpu.core_type<tc>, window_params = [{transform_indices = @transform_0, window_bounds = array<i64: 8, 32>}, {pipeline_mode = #tpu.pipeline_mode<synchronous>, transform_indices = @transform_1, window_bounds = array<i64: 32, 128>}, {pipeline_mode = #tpu.pipeline_mode<synchronous>, transform_indices = @transform_2, window_bounds = array<i64: 1, 128>}, {transform_indices = @transform_3, window_bounds = array<i64: 8, 128>}]} {
    %c0 = arith.constant 0 : index
    %c0_0 = arith.constant 0 : index
    %0 = vector.load %arg1[%c0, %c0_0] : memref<8x32xbf16, #tpu.memory_space<vmem>>, vector<8x32xbf16>
    %c0_1 = arith.constant 0 : index
    %c0_2 = arith.constant 0 : index
    %1 = vector.load %arg2[%c0_1, %c0_2] : memref<32x128xbf16, #tpu.memory_space<vmem>>, vector<32x128xbf16>
    %cst = arith.constant dense<0.000000e+00> : vector<8x128xf32>
    %2 = tpu.matmul %0, %1, %cst {dimension_numbers = #tpu.dot_dimension_numbers<[1], [0], [0], [1], [0, 0, 1, 1], [], []>} : vector<8x32xbf16>, vector<32x128xbf16>, vector<8x128xf32> -> vector<8x128xf32>
    %c0_3 = arith.constant 0 : index
    %c0_4 = arith.constant 0 : index
    %3 = vector.load %arg3[%c0_3, %c0_4] : memref<1x128xf32, #tpu.memory_space<vmem>>, vector<1x128xf32>
    %4 = vector.broadcast %3 : vector<1x128xf32> to vector<8x128xf32>
    %5 = arith.addf %2, %4 : vector<8x128xf32>
    %c0_5 = arith.constant 0 : index
    %c0_6 = arith.constant 0 : index
    %6 = vector.load %arg4[%c0_5, %c0_6] : memref<8x128xf32, #tpu.memory_space<vmem>>, vector<8x128xf32>
    tpu.vector_store %arg4[%c0_5, %c0_6], %5 {strides = array<i32>} : memref<8x128xf32, #tpu.memory_space<vmem>>, vector<8x128xf32>,
    return
  }
  func.func @transform_0(%arg0: i32) -> (i32, i32) {
    %c0_i32 = arith.constant 0 : i32
    %c0_i32_0 = arith.constant 0 : i32
    return %arg0, %c0_i32 : i32, i32
  }
  func.func @transform_1(%arg0: i32) -> (i32, i32) {
    %c0_i32 = arith.constant 0 : i32
    %c0_i32_0 = arith.constant 0 : i32
    %c0_i32_1 = arith.constant 0 : i32
    return %c0_i32, %c0_i32_0 : i32, i32
  }
  func.func @transform_2(%arg0: i32) -> (i32, i32) {
    %c0_i32 = arith.constant 0 : i32
    %c0_i32_0 = arith.constant 0 : i32
    %c0_i32_1 = arith.constant 0 : i32
    return %c0_i32, %c0_i32_0 : i32, i32
  }
  func.func @transform_3(%arg0: i32) -> (i32, i32) {
    %c0_i32 = arith.constant 0 : i32
    %c0_i32_0 = arith.constant 0 : i32
    return %arg0, %c0_i32 : i32, i32
  }
}

module attributes {stable_mosaic.version = 11 : i64} {
  func.func @_mask_head_kernel(%arg0: i32, %arg1: memref<128x16xbf16, #tpu.memory_space<vmem>>, %arg2: memref<16x128xbf16, #tpu.memory_space<vmem>>, %arg3: memref<1x128xf32, #tpu.memory_space<vmem>>, %arg4: memref<32x32xbf16, #tpu.memory_space<vmem>>, %arg5: memref<1x32xf32, #tpu.memory_space<vmem>>, %arg6: memref<128x128xf32, #tpu.memory_space<vmem>>) attributes {dimension_semantics = [#tpu.dimension_semantics<parallel>], iteration_bounds = array<i64: 2>, scalar_prefetch = 0 : i64, scratch_operands = 0 : i64, tpu.core_type = #tpu.core_type<tc>, window_params = [{transform_indices = @transform_0, window_bounds = array<i64: 128, 16>}, {pipeline_mode = #tpu.pipeline_mode<synchronous>, transform_indices = @transform_1, window_bounds = array<i64: 16, 128>}, {pipeline_mode = #tpu.pipeline_mode<synchronous>, transform_indices = @transform_2, window_bounds = array<i64: 1, 128>}, {pipeline_mode = #tpu.pipeline_mode<synchronous>, transform_indices = @transform_3, window_bounds = array<i64: 32, 32>}, {pipeline_mode = #tpu.pipeline_mode<synchronous>, transform_indices = @transform_4, window_bounds = array<i64: 1, 32>}, {transform_indices = @transform_5, window_bounds = array<i64: 128, 128>}]} {
    %c0 = arith.constant 0 : index
    %c0_0 = arith.constant 0 : index
    %0 = vector.load %arg1[%c0, %c0_0] : memref<128x16xbf16, #tpu.memory_space<vmem>>, vector<128x16xbf16>
    %c0_1 = arith.constant 0 : index
    %c0_2 = arith.constant 0 : index
    %1 = vector.load %arg2[%c0_1, %c0_2] : memref<16x128xbf16, #tpu.memory_space<vmem>>, vector<16x128xbf16>
    %cst = arith.constant dense<0.000000e+00> : vector<128x128xf32>
    %2 = tpu.matmul %0, %1, %cst {dimension_numbers = #tpu.dot_dimension_numbers<[1], [0], [0], [1], [0, 0, 1, 1], [], []>} : vector<128x16xbf16>, vector<16x128xbf16>, vector<128x128xf32> -> vector<128x128xf32>
    %c0_3 = arith.constant 0 : index
    %c0_4 = arith.constant 0 : index
    %3 = vector.load %arg3[%c0_3, %c0_4] : memref<1x128xf32, #tpu.memory_space<vmem>>, vector<1x128xf32>
    %4 = vector.broadcast %3 : vector<1x128xf32> to vector<128x128xf32>
    %5 = arith.addf %2, %4 : vector<128x128xf32>
    %cst_5 = arith.constant 0.000000e+00 : f32
    %6 = vector.broadcast %cst_5 : f32 to vector<128x128xf32>
    %7 = arith.maximumf %5, %6 : vector<128x128xf32>
    %8 = vector.extract_strided_slice %7 {offsets = [0, 0], sizes = [128, 32], strides = [1, 1]} : vector<128x128xf32> to vector<128x32xf32>
    %9 = arith.truncf %8 : vector<128x32xf32> to vector<128x32xbf16>
    %c0_6 = arith.constant 0 : index
    %c0_7 = arith.constant 0 : index
    %10 = vector.load %arg4[%c0_6, %c0_7] : memref<32x32xbf16, #tpu.memory_space<vmem>>, vector<32x32xbf16>
    %cst_8 = arith.constant dense<0.000000e+00> : vector<128x32xf32>
    %11 = tpu.matmul %9, %10, %cst_8 {dimension_numbers = #tpu.dot_dimension_numbers<[1], [0], [0], [1], [0, 0, 1, 1], [], []>} : vector<128x32xbf16>, vector<32x32xbf16>, vector<128x32xf32> -> vector<128x32xf32>
    %c0_9 = arith.constant 0 : index
    %c0_10 = arith.constant 0 : index
    %12 = vector.load %arg5[%c0_9, %c0_10] : memref<1x32xf32, #tpu.memory_space<vmem>>, vector<1x32xf32>
    %13 = vector.broadcast %12 : vector<1x32xf32> to vector<128x32xf32>
    %14 = arith.addf %11, %13 : vector<128x32xf32>
    %15 = vector.extract_strided_slice %7 {offsets = [0, 32], sizes = [128, 32], strides = [1, 1]} : vector<128x128xf32> to vector<128x32xf32>
    %16 = arith.truncf %15 : vector<128x32xf32> to vector<128x32xbf16>
    %c0_11 = arith.constant 0 : index
    %c0_12 = arith.constant 0 : index
    %17 = vector.load %arg4[%c0_11, %c0_12] : memref<32x32xbf16, #tpu.memory_space<vmem>>, vector<32x32xbf16>
    %cst_13 = arith.constant dense<0.000000e+00> : vector<128x32xf32>
    %18 = tpu.matmul %16, %17, %cst_13 {dimension_numbers = #tpu.dot_dimension_numbers<[1], [0], [0], [1], [0, 0, 1, 1], [], []>} : vector<128x32xbf16>, vector<32x32xbf16>, vector<128x32xf32> -> vector<128x32xf32>
    %c0_14 = arith.constant 0 : index
    %c0_15 = arith.constant 0 : index
    %19 = vector.load %arg5[%c0_14, %c0_15] : memref<1x32xf32, #tpu.memory_space<vmem>>, vector<1x32xf32>
    %20 = vector.broadcast %19 : vector<1x32xf32> to vector<128x32xf32>
    %21 = arith.addf %18, %20 : vector<128x32xf32>
    %22 = vector.extract_strided_slice %7 {offsets = [0, 64], sizes = [128, 32], strides = [1, 1]} : vector<128x128xf32> to vector<128x32xf32>
    %23 = arith.truncf %22 : vector<128x32xf32> to vector<128x32xbf16>
    %c0_16 = arith.constant 0 : index
    %c0_17 = arith.constant 0 : index
    %24 = vector.load %arg4[%c0_16, %c0_17] : memref<32x32xbf16, #tpu.memory_space<vmem>>, vector<32x32xbf16>
    %cst_18 = arith.constant dense<0.000000e+00> : vector<128x32xf32>
    %25 = tpu.matmul %23, %24, %cst_18 {dimension_numbers = #tpu.dot_dimension_numbers<[1], [0], [0], [1], [0, 0, 1, 1], [], []>} : vector<128x32xbf16>, vector<32x32xbf16>, vector<128x32xf32> -> vector<128x32xf32>
    %c0_19 = arith.constant 0 : index
    %c0_20 = arith.constant 0 : index
    %26 = vector.load %arg5[%c0_19, %c0_20] : memref<1x32xf32, #tpu.memory_space<vmem>>, vector<1x32xf32>
    %27 = vector.broadcast %26 : vector<1x32xf32> to vector<128x32xf32>
    %28 = arith.addf %25, %27 : vector<128x32xf32>
    %29 = vector.extract_strided_slice %7 {offsets = [0, 96], sizes = [128, 32], strides = [1, 1]} : vector<128x128xf32> to vector<128x32xf32>
    %30 = arith.truncf %29 : vector<128x32xf32> to vector<128x32xbf16>
    %c0_21 = arith.constant 0 : index
    %c0_22 = arith.constant 0 : index
    %31 = vector.load %arg4[%c0_21, %c0_22] : memref<32x32xbf16, #tpu.memory_space<vmem>>, vector<32x32xbf16>
    %cst_23 = arith.constant dense<0.000000e+00> : vector<128x32xf32>
    %32 = tpu.matmul %30, %31, %cst_23 {dimension_numbers = #tpu.dot_dimension_numbers<[1], [0], [0], [1], [0, 0, 1, 1], [], []>} : vector<128x32xbf16>, vector<32x32xbf16>, vector<128x32xf32> -> vector<128x32xf32>
    %c0_24 = arith.constant 0 : index
    %c0_25 = arith.constant 0 : index
    %33 = vector.load %arg5[%c0_24, %c0_25] : memref<1x32xf32, #tpu.memory_space<vmem>>, vector<1x32xf32>
    %34 = vector.broadcast %33 : vector<1x32xf32> to vector<128x32xf32>
    %35 = arith.addf %32, %34 : vector<128x32xf32>
    %36 = tpu.concatenate %14, %21, %28, %35 in 1 : vector<128x32xf32>, vector<128x32xf32>, vector<128x32xf32>, vector<128x32xf32> -> vector<128x128xf32>
    %c0_26 = arith.constant 0 : index
    %c0_27 = arith.constant 0 : index
    %37 = vector.load %arg6[%c0_26, %c0_27] : memref<128x128xf32, #tpu.memory_space<vmem>>, vector<128x128xf32>
    tpu.vector_store %arg6[%c0_26, %c0_27], %36 {strides = array<i32>} : memref<128x128xf32, #tpu.memory_space<vmem>>, vector<128x128xf32>,
    return
  }
  func.func @transform_0(%arg0: i32) -> (i32, i32) {
    %c0_i32 = arith.constant 0 : i32
    %c0_i32_0 = arith.constant 0 : i32
    return %arg0, %c0_i32 : i32, i32
  }
  func.func @transform_1(%arg0: i32) -> (i32, i32) {
    %c0_i32 = arith.constant 0 : i32
    %c0_i32_0 = arith.constant 0 : i32
    %c0_i32_1 = arith.constant 0 : i32
    return %c0_i32, %c0_i32_0 : i32, i32
  }
  func.func @transform_2(%arg0: i32) -> (i32, i32) {
    %c0_i32 = arith.constant 0 : i32
    %c0_i32_0 = arith.constant 0 : i32
    %c0_i32_1 = arith.constant 0 : i32
    return %c0_i32, %c0_i32_0 : i32, i32
  }
  func.func @transform_3(%arg0: i32) -> (i32, i32) {
    %c0_i32 = arith.constant 0 : i32
    %c0_i32_0 = arith.constant 0 : i32
    %c0_i32_1 = arith.constant 0 : i32
    return %c0_i32, %c0_i32_0 : i32, i32
  }
  func.func @transform_4(%arg0: i32) -> (i32, i32) {
    %c0_i32 = arith.constant 0 : i32
    %c0_i32_0 = arith.constant 0 : i32
    %c0_i32_1 = arith.constant 0 : i32
    return %c0_i32, %c0_i32_0 : i32, i32
  }
  func.func @transform_5(%arg0: i32) -> (i32, i32) {
    %c0_i32 = arith.constant 0 : i32
    %c0_i32_0 = arith.constant 0 : i32
    return %arg0, %c0_i32 : i32, i32
  }
}

</mosaic_0001>

<bundles_post_ra>
// kernel: maskrcnn_heads_forward.2
= control target key start
LH: loop header
LB: loop body
LE: loop exit
PB: predicated region body
PF: predicated region fallthrough
CT: control target
= control target key end

     0   :  { %v107_v0 = vmov 0.0   ;;  %vm108_vm0 = vmmov 0   ;;  %vm39_vm1 = vcmask 261120   ;;  %s144_s1 = inlined_call_operand.vmem [shape: bf16[32,128], index: 1, kind: input, shape index: {}]   ;;  %s145_s0 = inlined_call_operand.vmem [shape: bf16[8,32], index: 0, kind: input, shape index: {}]   ;;  %s146_s2 = inlined_call_operand.vmem [shape: f32[1,128], index: 2, kind: input, shape index: {}]   ;;  %s147_s3 = inlined_call_operand.vmem [shape: f32[8,128], index: 3, kind: output, shape index: {}]  }
   0x1   :  { %95 = vmatprep.subr.bf16.mxu0 %v107_v0  ;;  %v105_v1 = vld [vmem:[%s144_s1 + $0x8] sm:$0xff]   ;;  %99 = vmatprep.mubr.msk.bf16.mxu0 %vm108_vm0, %v107_v0  ;;  %v106_v2 = vld [vmem:[%s144_s1] sm:$0xff]  }
   0x2   :  { %96 = vmatpush3.bf16.msra.mxu0 %v105_v1  ;;  %v15_v3 = vld [vmem:[%s145_s0] sm:$0xf] }
   0x3   :  { %97 = vmatprep.subr.bf16.mxu0 %v107_v0  ;;  %v88_v4 = vld [vmem:[%s146_s2] ss:$0 sm:$0xff] }
   0x6   :  { %98 = vmatpush3.bf16.msra.mxu0 %v106_v2 }
   0x9   :  { %100 = vmatmul.mubr.msk.bf16.vlgmr.msra.gmra.mxu0 %vm39_vm1, %v15_v3 }
  0xc9   :  { %v77_v5 = vpop.f32.mrf.mxu0 }
  0xca   :  { %v78_v6 = vadd.f32 %v88_v4, %v77_v5 }
  0xcb   :  { %v101_v7 = vpop.f32.mrf.mxu0 }
  0xcc   :  { %83 = vst [vmem:[%s147_s3] sm:$0xff] %v78_v6 }
  0xcd   :  { %v80_v8 = vpop.f32.mrf.mxu0 }
  0xcf   :  { %v102_v9 = vpop.f32.mrf.mxu0 }

// kernel: maskrcnn_heads_forward.3
= control target key start
LH: loop header
LB: loop body
LE: loop exit
PB: predicated region body
PF: predicated region fallthrough
CT: control target
= control target key end

     0   :  { %s1600_s18 = smov 0   ;;  %s2002_s0 = inlined_call_operand.vmem [shape: bf16[256,16], index: 0, kind: input, shape index: {}]   ;;  %s2003_s1 = inlined_call_operand.vmem [shape: bf16[16,128], index: 1, kind: input, shape index: {}]   ;;  %s2004_s2 = inlined_call_operand.vmem [shape: f32[1,128], index: 2, kind: input, shape index: {}]   ;;  %s2005_s3 = inlined_call_operand.vmem [shape: bf16[32,32], index: 3, kind: input, shape index: {}]   ;;  %s2006_s4 = inlined_call_operand.vmem [shape: f32[1,32], index: 4, kind: input, shape index: {}]   ;;  %s2007_s5 = inlined_call_operand.vmem [shape: f32[256,128], index: 5, kind: output, shape index: {}]  }
   0x1 LB: > { %s1324_s19 = sadd.s32 4294967295, %s1565_s18   ;;  %p1328_p0 = scmp.ge.s32.totalorder %s1565_s18, 1  ;;  %s1565_s18 = sphi %s1600_s18, %s15_s18  }
   0x2   : > { %p188_p1 = scmp.lt.s32.totalorder %s1565_s18, 3 }
   0x4   : > { %p189_p2 = pnand %p1328_p0, %p188_p1 }
   0x5   : > { %s1329_s22 = sshll.u32 (!%p189_p2), %s1324_s19, 4  ;;  %s1567_s8 = smov (!%p189_p2), 96  }
   0x6   : > { %192 = sbr.rel (%p189_p2) target bundleno = 764 (0x2fc), region = 40  ;;  %p217_p3 = scmp.lt.s32.totalorder (!%p189_p2), %s1329_s22, 31 }
   0x7   : > { %s1568_s9 = smov (!%p189_p2), 64   ;;  %s1569_s10 = smov (!%p189_p2), 32  }
   0xb   : > { %v1548_v0 = vld [vmem:[%s2003_s1] sm:$0xff]   ;;  %s2009_s22 = smov (!%p217_p3, %s1329_s22), 31  ;;  %vm300_vm0 = vcmask 130048   ;;  %v1628_v9 = vld [vmem:[%s2005_s3 + $0x8] sm:$0xff]   ;;  %vm469_vm1 = vcmask 261120   ;;  %vm1218_vm2 = vcmask 523264  }
   0xc   : > { %1437 = vmatprep.subr.bf16.mxu0 %v1548_v0  ;;  %1535 = vmatprep.subr.bf16.mxu1 %v1548_v0  ;;  %s1330_s23 = sshll.u32 %s2009_s22, 2  ;;  %v1637_v10 = vld [vmem:[%s2005_s3] sm:$0xff]   ;;  %s1332_s13 = sshll.u32 %s2009_s22, 3  ;;  %vm1235_vm3 = vcmask 785408  }
   0xd   : > { %1438 = vmatpush3.bf16.msra.mxu0 %v1548_v0  ;;  %1536 = vmatpush3.bf16.msra.mxu1 %v1548_v0  ;;  %s220_s26 = scalar_lea.vmem %s2002_s0, %s1330_s23  ;;  %v1333_v14 = vld [vmem:[%s2004_s2] ss:$0 sm:$0xff]  ;;  %s1884_s16 = scalar_lea.vmem %s2007_s5, %s1332_s13 }
   0xe   : > { %v1549_v1 = vld [vmem:[%s220_s26] sm:$0xff]   ;;  %v1550_v2 = vld [vmem:[%s220_s26 + $0x8] sm:$0xff]   ;;  %v1553_v5 = vld [vmem:[%s220_s26 + $0x10] sm:$0xff]   ;;  %1455 = vmatprep.subr.bf16.mxu1 %v1628_v9  ;;  %1475 = vmatprep.subr.bf16.mxu0 %v1628_v9 }
   0xf   : > { %1439 = vmatprep.mubr.msk.bf16.mxu0 %vm300_vm0, %v1549_v1  ;;  %v1551_v3 = vld [vmem:[%s220_s26 + $0x20] sm:$0xff]   ;;  %v1552_v4 = vld [vmem:[%s220_s26 + $0x28] sm:$0xff]   ;;  %v1555_v6 = vld [vmem:[%s220_s26 + $0x30] sm:$0xff]  }
  0x10   : > { %1440 = vmatmul.mubr.msk.bf16.vlgmr.msra.gmra.mxu0 %vm300_vm0, %v1550_v2  ;;  %1447 = vmatprep.mubr.msk.bf16.mxu1 %vm300_vm0, %v1551_v3  ;;  %v1554_v7 = vld [vmem:[%s220_s26 + $0x18] sm:$0xff]  }
  0x11   : > { %1448 = vmatmul.mubr.msk.bf16.vlgmr.msra.gmra.mxu1 %vm300_vm0, %v1552_v4  ;;  %1443 = vmatprep.mubr.msk.bf16.mxu0 %vm300_vm0, %v1553_v5  ;;  %v1556_v8 = vld [vmem:[%s220_s26 + $0x38] sm:$0xff]  }
  0x12   : > { %1451 = vmatprep.mubr.msk.bf16.mxu1 %vm300_vm0, %v1555_v6  ;;  %1456 = vmatpush3.bf16.msra.mxu1 %v1628_v9 }
  0x13   : > { %1476 = vmatpush3.bf16.msra.mxu0 %v1628_v9  ;;  %1457 = vmatprep.subr.bf16.mxu1 %v1637_v10 }
  0x14   : > { %1477 = vmatprep.subr.bf16.mxu0 %v1637_v10 }
  0x16   : > { %1458 = vmatpush3.bf16.msra.mxu1 %v1637_v10 }
  0x17   : > { %1478 = vmatpush3.bf16.msra.mxu0 %v1637_v10  ;;  %1495 = vmatprep.subr.bf16.mxu1 %v1628_v9 }
  0x18   : > { %1444 = vmatmul.mubr.msk.bf16.gmra.mxu0 %vm300_vm0, %v1554_v7  ;;  %1515 = vmatprep.subr.bf16.mxu0 %v1628_v9 }
  0x19   : > { %1452 = vmatmul.mubr.msk.bf16.gmra.mxu1 %vm300_vm0, %v1556_v8 }
  0xd0   : > { %v1441_v11 = vpop.f32.mrf.mxu0 }
  0xd1   : > { %v1449_v13 = vpop.f32.mrf.mxu1  ;;  %v368_v19 = vadd.f32 %v1441_v11, %v1333_v14 }
  0xd2   : > { %v359_v12 = vpop.f32.mrf.mxu0  ;;  %v400_v52 = vadd.f32 %v1449_v13, %v1333_v14 }
  0xd3   : > { %v391_v16 = vpop.f32.mrf.mxu1  ;;  %v360_v17 = vadd.f32 %v1333_v14, %v359_v12  ;;  %v424_v28 = vmax.f32 %v368_v19, 0.0 }
  0xd4   : > { %v1442_v15 = vpop.f32.mrf.mxu0  ;;  %v392_v32 = vadd.f32 %v1333_v14, %v391_v16  ;;  %v432_v60 = vmax.f32 %v400_v52, 0.0 }
  0xd5   : > { %v371_v18 = vadd.f32 %v1442_v15, %v1333_v14  ;;  %v1450_v21 = vpop.f32.mrf.mxu1  ;;  %v422_v26 = vmax.f32 %v360_v17, 0.0 }
  0xd6   : > { %v362_v20 = vpop.f32.mrf.mxu0  ;;  %v430_v42 = vmax.f32 %v392_v32, 0.0  ;;  %v403_v53 = vadd.f32 %v1450_v21, %v1333_v14 }
  0xd7   : > { %v363_v22 = vadd.f32 %v1333_v14, %v362_v20  ;;  %v425_v23 = vmax.f32 %v371_v18, 0.0  ;;  %v394_v25 = vpop.f32.mrf.mxu1 }
  0xd8   : > { %v1445_v24 = vpop.f32.mrf.mxu0  ;;  %v395_v33 = vadd.f32 %v1333_v14, %v394_v25  ;;  %v433_v61 = vmax.f32 %v403_v53, 0.0 }
  0xd9   : > { %v423_v27 = vmax.f32 %v363_v22, 0.0  ;;  %v1453_v30 = vpop.f32.mrf.mxu1  ;;  %v439_v34 = vpack.c.bf16 %v425_v23, %v424_v28  ;;  %v384_v43 = vadd.f32 %v1445_v24, %v1333_v14 }
  0xda   : > { %v375_v29 = vpop.f32.mrf.mxu0  ;;  %v431_v44 = vmax.f32 %v395_v33, 0.0  ;;  %v416_v62 = vadd.f32 %v1453_v30, %v1333_v14  ;;  %v443_v0 = vpack.c.bf16 %v433_v61, %v432_v60 }
  0xdb   : > { %v438_v31 = vpack.c.bf16 %v423_v27, %v422_v26  ;;  %v376_v35 = vadd.f32 %v1333_v14, %v375_v29  ;;  %v407_v37 = vpop.f32.mrf.mxu1  ;;  %v428_v54 = vmax.f32 %v384_v43, 0.0 }
  0xdc   : > { %v1446_v36 = vpop.f32.mrf.mxu0  ;;  %v408_v39 = vadd.f32 %v1333_v14, %v407_v37  ;;  %v442_v55 = vpack.c.bf16 %v431_v44, %v430_v42  ;;  %v436_v1 = vmax.f32 %v416_v62, 0.0 }
  0xdd   : > { %v387_v38 = vadd.f32 %v1446_v36, %v1333_v14  ;;  %599 = vrot.lane.b32.xlu0 %v438_v31, %s1567_s8  ;;  %1459 = vmatprep.mubr.msk.bf16.mxu1 %vm469_vm1, %v438_v31  ;;  %v1454_v41 = vpop.f32.mrf.mxu1  ;;  %v426_v46 = vmax.f32 %v376_v35, 0.0 }
  0xde   : > { %v378_v40 = vpop.f32.mrf.mxu0  ;;  %1460 = vmatmul.mubr.msk.bf16.vlgmr.msra.gmra.mxu1 %vm469_vm1, %v439_v34  ;;  %v434_v50 = vmax.f32 %v408_v39, 0.0  ;;  %v419_v63 = vadd.f32 %v1454_v41, %v1333_v14  ;;  %v1735_v39 = vld [vmem:[%s2006_s4] ss:$0 sm:$0xff] }
  0xdf   : > { %v379_v45 = vadd.f32 %v1333_v14, %v378_v40  ;;  %1496 = vmatpush3.bf16.msra.mxu1 %v1628_v9  ;;  %v410_v47 = vpop.f32.mrf.mxu1  ;;  %v429_v48 = vmax.f32 %v387_v38, 0.0 }
  0xe0   : > { %1497 = vmatprep.subr.bf16.mxu1 %v1637_v10  ;;  %v411_v51 = vadd.f32 %v1333_v14, %v410_v47  ;;  %v437_v2 = vmax.f32 %v419_v63, 0.0 }
  0xe1   : > { %v427_v49 = vmax.f32 %v379_v45, 0.0  ;;  %601 = vrot.lane.b32.xlu0 %v439_v34, %s1567_s8  ;;  %v441_v58 = vpack.c.bf16 %v429_v48, %v428_v54 }
  0xe2   : > { %v435_v57 = vmax.f32 %v411_v51, 0.0  ;;  %v445_v3 = vpack.c.bf16 %v437_v2, %v436_v1 }
  0xe3   : > { %v440_v56 = vpack.c.bf16 %v427_v49, %v426_v46  ;;  %1498 = vmatpush3.bf16.msra.mxu1 %v1637_v10 }
  0xe4   : > { %v444_v59 = vpack.c.bf16 %v435_v57, %v434_v50 }
  0xe5   : > { %603 = vrot.lane.b32.xlu1 %v440_v56, %s1567_s8  ;;  %607 = vrot.lane.b32.xlu0 %v442_v55, %s1567_s8 }
  0xe6   : > { %1463 = vmatprep.mubr.msk.bf16.mxu1 %vm469_vm1, %v440_v56 }
  0xe7   : > { %1464 = vmatmul.mubr.msk.bf16.gmra.mxu1 %vm469_vm1, %v441_v58 }
  0xe8   : > { %1467 = vmatprep.mubr.msk.bf16.mxu1 %vm469_vm1, %v442_v55 }
  0xe9   : > { %605 = vrot.lane.b32.xlu1 %v441_v58, %s1567_s8  ;;  %611 = vrot.lane.b32.xlu0 %v444_v59, %s1567_s8 }
  0xed   : > { %609 = vrot.lane.b32.xlu1 %v443_v0, %s1567_s8  ;;  %736 = vrot.lane.b32.xlu0 %v438_v31, %s1568_s9 }
  0xef   : > { %1468 = vmatmul.mubr.msk.bf16.gmra.mxu1 %vm469_vm1, %v443_v0 }
  0xf0   : > { %1471 = vmatprep.mubr.msk.bf16.mxu1 %vm469_vm1, %v444_v59 }
  0xf1   : > { %613 = vrot.lane.b32.xlu1 %v445_v3, %s1567_s8  ;;  %873 = vrot.lane.b32.xlu0 %v438_v31, %s1569_s10 }
  0xf5   : > { %738 = vrot.lane.b32.xlu1 %v439_v34, %s1568_s9  ;;  %740 = vrot.lane.b32.xlu0 %v440_v56, %s1568_s9 }
  0xf7   : > { %1472 = vmatmul.mubr.msk.bf16.gmra.mxu1 %vm469_vm1, %v445_v3 }
  0xf9   : > { %875 = vrot.lane.b32.xlu1 %v439_v34, %s1569_s10  ;;  %877 = vrot.lane.b32.xlu0 %v440_v56, %s1569_s10 }
  0xfd   : > { %742 = vrot.lane.b32.xlu1 %v441_v58, %s1568_s9  ;;  %744 = vrot.lane.b32.xlu0 %v442_v55, %s1568_s9 }
 0x101   : > { %879 = vrot.lane.b32.xlu1 %v441_v58, %s1569_s10  ;;  %881 = vrot.lane.b32.xlu0 %v442_v55, %s1569_s10 }
 0x105   : > { %746 = vrot.lane.b32.xlu1 %v443_v0, %s1568_s9  ;;  %748 = vrot.lane.b32.xlu0 %v444_v59, %s1568_s9 }
 0x109   : > { %883 = vrot.lane.b32.xlu1 %v443_v0, %s1569_s10  ;;  %885 = vrot.lane.b32.xlu0 %v444_v59, %s1569_s10 }
 0x10d   : > { %750 = vrot.lane.b32.xlu1 %v445_v3, %s1568_s9 }
 0x111   : > { %887 = vrot.lane.b32.xlu1 %v445_v3, %s1569_s10 }
 0x14f   : > { %v600_v4 = vpop.permute.xlu0 %599 }
 0x150   : > { %1479 = vmatprep.mubr.msk.bf16.mxu0 %vm469_vm1, %v600_v4 }
 0x153   : > { %v602_v5 = vpop.permute.xlu0 %601 }
 0x154   : > { %1480 = vmatmul.mubr.msk.bf16.vlgmr.msra.gmra.mxu0 %vm469_vm1, %v602_v5 }
 0x155   : > { %1516 = vmatpush3.bf16.msra.mxu0 %v1628_v9 }
 0x156   : > { %1517 = vmatprep.subr.bf16.mxu0 %v1637_v10 }
 0x157   : > { %v604_v6 = vpop.permute.xlu1 %603  ;;  %v608_v7 = vpop.permute.xlu0 %607 }
 0x158   : > { %1483 = vmatprep.mubr.msk.bf16.mxu0 %vm469_vm1, %v604_v6 }
 0x159   : > { %1518 = vmatpush3.bf16.msra.mxu0 %v1637_v10 }
 0x15b   : > { %v606_v8 = vpop.permute.xlu1 %605  ;;  %v612_v11 = vpop.permute.xlu0 %611 }
 0x15c   : > { %1484 = vmatmul.mubr.msk.bf16.gmra.mxu0 %vm469_vm1, %v606_v8 }
 0x15d   : > { %1487 = vmatprep.mubr.msk.bf16.mxu0 %vm469_vm1, %v608_v7 }
 0x15f   : > { %v610_v12 = vpop.permute.xlu1 %609  ;;  %v737_v13 = vpop.permute.xlu0 %736 }
 0x160   : > { %1499 = vmatprep.mubr.msk.bf16.mxu1 %vm469_vm1, %v737_v13 }
 0x163   : > { %v614_v14 = vpop.permute.xlu1 %613  ;;  %v874_v9 = vpop.permute.xlu0 %873 }
 0x164   : > { %1488 = vmatmul.mubr.msk.bf16.gmra.mxu0 %vm469_vm1, %v610_v12 }
 0x165   : > { %1491 = vmatprep.mubr.msk.bf16.mxu0 %vm469_vm1, %v612_v11 }
 0x167   : > { %v739_v15 = vpop.permute.xlu1 %738  ;;  %v741_v16 = vpop.permute.xlu0 %740 }
 0x168   : > { %1500 = vmatmul.mubr.msk.bf16.vlgmr.msra.gmra.mxu1 %vm469_vm1, %v739_v15 }
 0x169   : > { %1503 = vmatprep.mubr.msk.bf16.mxu1 %vm469_vm1, %v741_v16 }
 0x16b   : > { %v876_v10 = vpop.permute.xlu1 %875  ;;  %v878_v17 = vpop.permute.xlu0 %877 }
 0x16c   : > { %1492 = vmatmul.mubr.msk.bf16.gmra.mxu0 %vm469_vm1, %v614_v14 }
 0x16d   : > { %1519 = vmatprep.mubr.msk.bf16.mxu0 %vm469_vm1, %v874_v9 }
 0x16f   : > { %v743_v18 = vpop.permute.xlu1 %742  ;;  %v745_v19 = vpop.permute.xlu0 %744 }
 0x170   : > { %1504 = vmatmul.mubr.msk.bf16.gmra.mxu1 %vm469_vm1, %v743_v18 }
 0x171   : > { %1507 = vmatprep.mubr.msk.bf16.mxu1 %vm469_vm1, %v745_v19 }
 0x173   : > { %v880_v20 = vpop.permute.xlu1 %879  ;;  %v882_v21 = vpop.permute.xlu0 %881 }
 0x174   : > { %1520 = vmatmul.mubr.msk.bf16.vlgmr.msra.gmra.mxu0 %vm469_vm1, %v876_v10 }
 0x175   : > { %1523 = vmatprep.mubr.msk.bf16.mxu0 %vm469_vm1, %v878_v17 }
 0x177   : > { %v747_v22 = vpop.permute.xlu1 %746  ;;  %v749_v23 = vpop.permute.xlu0 %748 }
 0x178   : > { %1508 = vmatmul.mubr.msk.bf16.gmra.mxu1 %vm469_vm1, %v747_v22 }
 0x179   : > { %1511 = vmatprep.mubr.msk.bf16.mxu1 %vm469_vm1, %v749_v23 }
 0x17b   : > { %v884_v24 = vpop.permute.xlu1 %883  ;;  %v886_v26 = vpop.permute.xlu0 %885 }
 0x17c   : > { %1524 = vmatmul.mubr.msk.bf16.gmra.mxu0 %vm469_vm1, %v880_v20 }
 0x17d   : > { %1527 = vmatprep.mubr.msk.bf16.mxu0 %vm469_vm1, %v882_v21 }
 0x17f   : > { %v751_v25 = vpop.permute.xlu1 %750 }
 0x180   : > { %1512 = vmatmul.mubr.msk.bf16.gmra.mxu1 %vm469_vm1, %v751_v25 }
 0x183   : > { %v888_v27 = vpop.permute.xlu1 %887 }
 0x184   : > { %1528 = vmatmul.mubr.msk.bf16.gmra.mxu0 %vm469_vm1, %v884_v24 }
 0x185   : > { %1531 = vmatprep.mubr.msk.bf16.mxu0 %vm469_vm1, %v886_v26 }
 0x18c   : > { %1532 = vmatmul.mubr.msk.bf16.gmra.mxu0 %vm469_vm1, %v888_v27 }
 0x19e   : > { %v1710_v28 = vpop.f32.mrf.mxu1 }
 0x1a0   : > { %v1712_v29 = vpop.f32.mrf.mxu1 }
 0x1a2   : > { %v1714_v30 = vpop.f32.mrf.mxu1 }
 0x1a4   : > { %v1716_v31 = vpop.f32.mrf.mxu1 }
 0x1a7   : > { %v1718_v32 = vpop.f32.mrf.mxu1 }
 0x1a9   : > { %v1720_v33 = vpop.f32.mrf.mxu1 }
 0x1ab   : > { %v1722_v34 = vpop.f32.mrf.mxu1 }
 0x1ad   : > { %v1724_v35 = vpop.f32.mrf.mxu1 }
 0x1af   : > { %v1726_v36 = vpop.f32.mrf.mxu1 }
 0x1b1   : > { %v1728_v37 = vpop.f32.mrf.mxu1 }
 0x1b3   : > { %v1730_v38 = vpop.f32.mrf.mxu1 }
 0x1b5   : > { %v1738_v42 = vpop.f32.mrf.mxu1 }
 0x1b7   : > { %v1742_v46 = vpop.f32.mrf.mxu1 }
 0x1b9   : > { %v1745_v49 = vpop.f32.mrf.mxu1 }
 0x1bb   : > { %v1747_v52 = vpop.f32.mrf.mxu1 }
 0x1bd   : > { %v1749_v55 = vpop.f32.mrf.mxu1 }
 0x214   : > { %v1481_v40 = vpop.f32.mrf.mxu0 }
 0x215   : > { %v682_v41 = vadd.f32 %v1481_v40, %v1735_v39 }
 0x216   : > { %v673_v43 = vpop.f32.mrf.mxu0 }
 0x217   : > { %1030 = vrot.lane.b32.xlu0 %v682_v41, %s1569_s10  ;;  %v674_v62 = vadd.f32 %v1735_v39, %v673_v43 }
 0x218   : > { %v1482_v44 = vpop.f32.mrf.mxu0 }
 0x219   : > { %v685_v45 = vadd.f32 %v1482_v44, %v1735_v39 }
 0x21a   : > { %v676_v47 = vpop.f32.mrf.mxu0 }
 0x21b   : > { %1032 = vrot.lane.b32.xlu1 %v685_v45, %s1569_s10  ;;  %v677_v2 = vadd.f32 %v1735_v39, %v676_v47 }
 0x21c   : > { %v1485_v48 = vpop.f32.mrf.mxu0 }
 0x21d   : > { %v698_v6 = vadd.f32 %v1485_v48, %v1735_v39 }
 0x21e   : > { %v689_v50 = vpop.f32.mrf.mxu0 }
 0x21f   : > { %v690_v15 = vadd.f32 %v1735_v39, %v689_v50 }
 0x220   : > { %v1486_v51 = vpop.f32.mrf.mxu0 }
 0x221   : > { %v701_v12 = vadd.f32 %v1486_v51, %v1735_v39 }
 0x222   : > { %v692_v53 = vpop.f32.mrf.mxu0 }
 0x223   : > { %v693_v18 = vadd.f32 %v1735_v39, %v692_v53 }
 0x224   : > { %v1489_v54 = vpop.f32.mrf.mxu0 }
 0x225   : > { %v714_v22 = vadd.f32 %v1489_v54, %v1735_v39 }
 0x226   : > { %v705_v56 = vpop.f32.mrf.mxu0 }
 0x227   : > { %v706_v43 = vadd.f32 %v1735_v39, %v705_v56 }
 0x228   : > { %v1501_v57 = vpop.f32.mrf.mxu1  ;;  %v1490_v59 = vpop.f32.mrf.mxu0 }
 0x229   : > { %v819_v58 = vadd.f32 %v1501_v57, %v1735_v39  ;;  %v717_v26 = vadd.f32 %v1490_v59, %v1735_v39 }
 0x22a   : > { %v810_v60 = vpop.f32.mrf.mxu1  ;;  %v708_v0 = vpop.f32.mrf.mxu0 }
 0x22b   : > { %1094 = vrot.lane.b32.xlu0 %v819_v58, %s1568_s9  ;;  %v811_v3 = vadd.f32 %v1735_v39, %v810_v60  ;;  %v709_v48 = vadd.f32 %v1735_v39, %v708_v0 }
 0x22c   : > { %v1502_v61 = vpop.f32.mrf.mxu1  ;;  %v1493_v4 = vpop.f32.mrf.mxu0 }
 0x22d   : > { %v822_v63 = vadd.f32 %v1502_v61, %v1735_v39  ;;  %v730_v54 = vadd.f32 %v1493_v4, %v1735_v39 }
 0x22e   : > { %v813_v1 = vpop.f32.mrf.mxu1  ;;  %v721_v8 = vpop.f32.mrf.mxu0 }
 0x22f   : > { %1026 = vrot.lane.b32.xlu0 %v674_v62, %s1569_s10  ;;  %1096 = vrot.lane.b32.xlu1 %v822_v63, %s1568_s9  ;;  %v814_v7 = vadd.f32 %v1735_v39, %v813_v1  ;;  %v722_v63 = vadd.f32 %v1735_v39, %v721_v8 }
 0x230   : > { %v1505_v5 = vpop.f32.mrf.mxu1  ;;  %v1494_v14 = vpop.f32.mrf.mxu0 }
 0x231   : > { %v835_v13 = vadd.f32 %v1505_v5, %v1735_v39  ;;  %v733_v59 = vadd.f32 %v1494_v14, %v1735_v39 }
 0x232   : > { %v826_v11 = vpop.f32.mrf.mxu1  ;;  %v724_v10 = vpop.f32.mrf.mxu0 }
 0x233   : > { %1028 = vrot.lane.b32.xlu1 %v677_v2, %s1569_s10  ;;  %1090 = vrot.lane.b32.xlu0 %v811_v3, %s1568_s9  ;;  %v827_v19 = vadd.f32 %v1735_v39, %v826_v11  ;;  %v725_v2 = vadd.f32 %v1735_v39, %v724_v10 }
 0x234   : > { %v1506_v9 = vpop.f32.mrf.mxu1  ;;  %v1521_v20 = vpop.f32.mrf.mxu0 }
 0x235   : > { %v838_v16 = vadd.f32 %v1506_v9, %v1735_v39 }
 0x236   : > { %v829_v17 = vpop.f32.mrf.mxu1  ;;  %v947_v24 = vpop.f32.mrf.mxu0 }
 0x237   : > { %1092 = vrot.lane.b32.xlu1 %v814_v7, %s1568_s9  ;;  %1038 = vrot.lane.b32.xlu0 %v698_v6, %s1569_s10  ;;  %v830_v23 = vadd.f32 %v1735_v39, %v829_v17  ;;  %v956_v6 = vadd.f32 %v1521_v20, %v1735_v39  ;;  %v948_v11 = vadd.f32 %v1735_v39, %v947_v24 }
 0x238   : > { %v1509_v21 = vpop.f32.mrf.mxu1  ;;  %v1522_v40 = vpop.f32.mrf.mxu0 }
 0x239   : > { %v851_v27 = vadd.f32 %v1509_v21, %v1735_v39 }
 0x23a   : > { %v842_v25 = vpop.f32.mrf.mxu1  ;;  %v950_v45 = vpop.f32.mrf.mxu0 }
 0x23b   : > { %1040 = vrot.lane.b32.xlu1 %v701_v12, %s1569_s10  ;;  %1102 = vrot.lane.b32.xlu0 %v835_v13, %s1568_s9  ;;  %v843_v50 = vadd.f32 %v1735_v39, %v842_v25  ;;  %v959_v12 = vadd.f32 %v1522_v40, %v1735_v39  ;;  %v951_v14 = vadd.f32 %v1735_v39, %v950_v45 }
 0x23c   : > { %v1510_v41 = vpop.f32.mrf.mxu1  ;;  %v1525_v51 = vpop.f32.mrf.mxu0 }
 0x23d   : > { %v854_v44 = vadd.f32 %v1510_v41, %v1735_v39  ;;  %v972_v9 = vadd.f32 %v1525_v51, %v1735_v39 }
 0x23e   : > { %v845_v47 = vpop.f32.mrf.mxu1  ;;  %v963_v57 = vpop.f32.mrf.mxu0 }
 0x23f   : > { %1104 = vrot.lane.b32.xlu1 %v838_v16, %s1568_s9  ;;  %1034 = vrot.lane.b32.xlu0 %v690_v15, %s1569_s10  ;;  %v846_v56 = vadd.f32 %v1735_v39, %v845_v47  ;;  %v964_v16 = vadd.f32 %v1735_v39, %v963_v57 }
 0x240   : > { %v1513_v53 = vpop.f32.mrf.mxu1  ;;  %v1526_v61 = vpop.f32.mrf.mxu0 }
 0x241   : > { %v867_v60 = vadd.f32 %v1513_v53, %v1735_v39  ;;  %v975_v10 = vadd.f32 %v1526_v61, %v1735_v39 }
 0x242   : > { %v858_v58 = vpop.f32.mrf.mxu1  ;;  %v966_v1 = vpop.f32.mrf.mxu0 }
 0x243   : > { %1036 = vrot.lane.b32.xlu1 %v693_v18, %s1569_s10  ;;  %1098 = vrot.lane.b32.xlu0 %v827_v19, %s1568_s9  ;;  %v859_v3 = vadd.f32 %v1735_v39, %v858_v58  ;;  %v967_v18 = vadd.f32 %v1735_v39, %v966_v1 }
 0x244   : > { %v1514_v62 = vpop.f32.mrf.mxu1  ;;  %v1529_v4 = vpop.f32.mrf.mxu0 }
 0x245   : > { %v870_v0 = vadd.f32 %v1514_v62, %v1735_v39  ;;  %v988_v19 = vadd.f32 %v1529_v4, %v1735_v39 }
 0x246   : > { %v861_v5 = vpop.f32.mrf.mxu1  ;;  %v979_v8 = vpop.f32.mrf.mxu0 }
 0x247   : > { %1100 = vrot.lane.b32.xlu1 %v830_v23, %s1568_s9  ;;  %1046 = vrot.lane.b32.xlu0 %v714_v22, %s1569_s10  ;;  %v862_v7 = vadd.f32 %v1735_v39, %v861_v5  ;;  %v980_v21 = vadd.f32 %v1735_v39, %v979_v8 }
 0x248   : > { %v1530_v13 = vpop.f32.mrf.mxu0 }
 0x249   : > { %v991_v22 = vadd.f32 %v1530_v13, %v1735_v39 }
 0x24a   : > { %v982_v15 = vpop.f32.mrf.mxu0 }
 0x24b   : > { %1048 = vrot.lane.b32.xlu1 %v717_v26, %s1569_s10  ;;  %1110 = vrot.lane.b32.xlu0 %v851_v27, %s1568_s9  ;;  %v983_v24 = vadd.f32 %v1735_v39, %v982_v15  ;;  %v537_v15 = vadd.f32 %v1710_v28, %v1735_v39  ;;  %v529_v28 = vadd.f32 %v1735_v39, %v1712_v29 }
 0x24c   : > { %v1533_v17 = vpop.f32.mrf.mxu0  ;;  %v553_v29 = vadd.f32 %v1718_v32, %v1735_v39  ;;  %v545_v32 = vadd.f32 %v1735_v39, %v1720_v33 }
 0x24d   : > { %v1004_v27 = vadd.f32 %v1533_v17, %v1735_v39 }
 0x24e   : > { %v995_v20 = vpop.f32.mrf.mxu0 }
 0x24f   : > { %1112 = vrot.lane.b32.xlu1 %v854_v44, %s1568_s9  ;;  %1042 = vrot.lane.b32.xlu0 %v706_v43, %s1569_s10  ;;  %v996_v25 = vadd.f32 %v1735_v39, %v995_v20 }
 0x250   : > { %v1534_v23 = vpop.f32.mrf.mxu0 }
 0x251   : > { %v1007_v41 = vadd.f32 %v1534_v23, %v1735_v39 }
 0x252   : > { %v998_v26 = vpop.f32.mrf.mxu0 }
 0x253   : > { %1044 = vrot.lane.b32.xlu1 %v709_v48, %s1569_s10  ;;  %1106 = vrot.lane.b32.xlu0 %v843_v50, %s1568_s9  ;;  %v999_v40 = vadd.f32 %v1735_v39, %v998_v26 }
 0x257   : > { %1108 = vrot.lane.b32.xlu1 %v846_v56, %s1568_s9  ;;  %1054 = vrot.lane.b32.xlu0 %v730_v54, %s1569_s10 }
 0x25b   : > { %1056 = vrot.lane.b32.xlu1 %v733_v59, %s1569_s10  ;;  %1118 = vrot.lane.b32.xlu0 %v867_v60, %s1568_s9 }
 0x25f   : > { %1120 = vrot.lane.b32.xlu1 %v870_v0, %s1568_s9  ;;  %1050 = vrot.lane.b32.xlu0 %v722_v63, %s1569_s10 }
 0x263   : > { %1052 = vrot.lane.b32.xlu1 %v725_v2, %s1569_s10  ;;  %1114 = vrot.lane.b32.xlu0 %v859_v3, %s1568_s9 }
 0x267   : > { %1116 = vrot.lane.b32.xlu1 %v862_v7, %s1568_s9  ;;  %1158 = vrot.lane.b32.xlu0 %v956_v6, %s1567_s8 }
 0x26b   : > { %1160 = vrot.lane.b32.xlu1 %v959_v12, %s1567_s8  ;;  %1154 = vrot.lane.b32.xlu0 %v948_v11, %s1567_s8 }
 0x26f   : > { %1156 = vrot.lane.b32.xlu1 %v951_v14, %s1567_s8  ;;  %1166 = vrot.lane.b32.xlu0 %v972_v9, %s1567_s8 }
 0x273   : > { %1168 = vrot.lane.b32.xlu1 %v975_v10, %s1567_s8  ;;  %1162 = vrot.lane.b32.xlu0 %v964_v16, %s1567_s8 }
 0x277   : > { %1164 = vrot.lane.b32.xlu1 %v967_v18, %s1567_s8  ;;  %1174 = vrot.lane.b32.xlu0 %v988_v19, %s1567_s8  ;;  %v540_v19 = vadd.f32 %v1714_v30, %v1735_v39 }
 0x27b   : > { %1176 = vrot.lane.b32.xlu1 %v991_v22, %s1567_s8  ;;  %1170 = vrot.lane.b32.xlu0 %v980_v21, %s1567_s8 }
 0x27f   : > { %1172 = vrot.lane.b32.xlu1 %v983_v24, %s1567_s8  ;;  %1178 = vrot.lane.b32.xlu0 %v996_v25, %s1567_s8 }
 0x283   : > { %1180 = vrot.lane.b32.xlu1 %v999_v40, %s1567_s8  ;;  %1182 = vrot.lane.b32.xlu0 %v1004_v27, %s1567_s8  ;;  %v532_v27 = vadd.f32 %v1735_v39, %v1716_v31 }
 0x287   : > { %1184 = vrot.lane.b32.xlu1 %v1007_v41, %s1567_s8 }
 0x289   : > { %v1031_v43 = vpop.permute.xlu0 %1030 }
 0x28a   : > { %v1204_v16 = vsel %vm469_vm1, %v537_v15, %v1031_v43 }
 0x28d   : > { %v1033_v44 = vpop.permute.xlu1 %1032 }
 0x28e   : > { %v1205_v21 = vsel %vm469_vm1, %v540_v19, %v1033_v44  ;;  %v561_v19 = vadd.f32 %v1735_v39, %v1728_v37 }
 0x29d   : > { %v1095_v45 = vpop.permute.xlu0 %1094 }
 0x29e   : > { %v1221_v10 = vsel %vm1218_vm2, %v1204_v16, %v1095_v45 }
 0x2a1   : > { %v1027_v47 = vpop.permute.xlu0 %1026  ;;  %v1097_v48 = vpop.permute.xlu1 %1096 }
 0x2a2   : > { %v1202_v22 = vsel %vm469_vm1, %v529_v28, %v1027_v47  ;;  %v1222_v23 = vsel %vm1218_vm2, %v1205_v21, %v1097_v48  ;;  %v556_v48 = vadd.f32 %v1722_v34, %v1735_v39  ;;  %v548_v34 = vadd.f32 %v1735_v39, %v1724_v35 }
 0x2a5   : > { %v1029_v50 = vpop.permute.xlu1 %1028  ;;  %v1091_v51 = vpop.permute.xlu0 %1090 }
 0x2a6   : > { %v1219_v24 = vsel %vm1218_vm2, %v1202_v22, %v1091_v51  ;;  %v1203_v41 = vsel %vm469_vm1, %v532_v27, %v1029_v50  ;;  %v585_v27 = vadd.f32 %v1742_v46, %v1735_v39 }
 0x2a9   : > { %v1093_v53 = vpop.permute.xlu1 %1092  ;;  %v1039_v54 = vpop.permute.xlu0 %1038 }
 0x2aa   : > { %v1208_v43 = vsel %vm469_vm1, %v553_v29, %v1039_v54  ;;  %v1220_v44 = vsel %vm1218_vm2, %v1203_v41, %v1093_v53  ;;  %v580_v29 = vadd.f32 %v1735_v39, %v1749_v55  ;;  %v588_v41 = vadd.f32 %v1747_v52, %v1735_v39 }
 0x2ad   : > { %v1041_v56 = vpop.permute.xlu1 %1040  ;;  %v1103_v57 = vpop.permute.xlu0 %1102 }
 0x2ae   : > { %v1225_v45 = vsel %vm1218_vm2, %v1208_v43, %v1103_v57  ;;  %v1209_v53 = vsel %vm469_vm1, %v556_v48, %v1041_v56 }
 0x2b1   : > { %v1105_v58 = vpop.permute.xlu1 %1104  ;;  %v1035_v59 = vpop.permute.xlu0 %1034 }
 0x2b2   : > { %v1206_v54 = vsel %vm469_vm1, %v545_v32, %v1035_v59  ;;  %v1226_v57 = vsel %vm1218_vm2, %v1209_v53, %v1105_v58 }
 0x2b5   : > { %v1843_v60 = vpop.permute.xlu1 %1036  ;;  %v1099_v61 = vpop.permute.xlu0 %1098 }
 0x2b6   : > { %v1223_v15 = vsel %vm1218_vm2, %v1206_v54, %v1099_v61  ;;  %v1207_v58 = vsel %vm469_vm1, %v548_v34, %v1843_v60 }
 0x2b9   : > { %v1845_v62 = vpop.permute.xlu1 %1100  ;;  %v1847_v63 = vpop.permute.xlu0 %1046 }
 0x2ba   : > { %v1224_v35 = vsel %vm1218_vm2, %v1207_v58, %v1845_v62 }
 0x2bd   : > { %v1849_v0 = vpop.permute.xlu1 %1048  ;;  %v1851_v1 = vpop.permute.xlu0 %1110 }
 0x2c1   : > { %v1853_v2 = vpop.permute.xlu1 %1112  ;;  %v1855_v3 = vpop.permute.xlu0 %1042 }
 0x2c5   : > { %v1857_v4 = vpop.permute.xlu1 %1044  ;;  %v1859_v5 = vpop.permute.xlu0 %1106 }
 0x2c9   : > { %v1861_v6 = vpop.permute.xlu1 %1108  ;;  %v1863_v7 = vpop.permute.xlu0 %1054 }
 0x2cd   : > { %v1865_v8 = vpop.permute.xlu1 %1056  ;;  %v1867_v11 = vpop.permute.xlu0 %1118 }
 0x2d1   : > { %v1869_v12 = vpop.permute.xlu1 %1120  ;;  %v1871_v13 = vpop.permute.xlu0 %1050 }
 0x2d5   : > { %v1873_v14 = vpop.permute.xlu1 %1052  ;;  %v1875_v9 = vpop.permute.xlu0 %1114 }
 0x2d9   : > { %v1887_v17 = vpop.permute.xlu1 %1116  ;;  %v1159_v18 = vpop.permute.xlu0 %1158 }
 0x2da   : > { %v1238_v20 = vsel %vm1235_vm3, %v1221_v10, %v1159_v18  ;;  %v569_v10 = vadd.f32 %v1726_v36, %v1735_v39 }
 0x2db   : > { %1254 = vst [vmem:[%s1884_s16 + $0x10] sm:$0xff] %v1238_v20  ;;  %v572_v20 = vadd.f32 %v1730_v38, %v1735_v39 }
 0x2dc   : > { %v1212_v59 = vsel %vm469_vm1, %v569_v10, %v1847_v63 }
 0x2dd   : > { %v1161_v25 = vpop.permute.xlu1 %1160  ;;  %v1155_v26 = vpop.permute.xlu0 %1154  ;;  %v1229_v61 = vsel %vm1218_vm2, %v1212_v59, %v1851_v1  ;;  %v1213_v62 = vsel %vm469_vm1, %v572_v20, %v1849_v0  ;;  %v1210_v1 = vsel %vm469_vm1, %v561_v19, %v1855_v3 }
 0x2de   : > { %v1239_v30 = vsel %vm1235_vm3, %v1222_v23, %v1161_v25  ;;  %v1236_v40 = vsel %vm1235_vm3, %v1219_v24, %v1155_v26  ;;  %v1230_v37 = vsel %vm1218_vm2, %v1213_v62, %v1853_v2  ;;  %v1227_v21 = vsel %vm1218_vm2, %v1210_v1, %v1859_v5 }
 0x2df   : > { %1255 = vst [vmem:[%s1884_s16 + $0x18] sm:$0xff] %v1239_v30  ;;  %1252 = vst [vmem:[%s1884_s16] sm:$0xff] %v1236_v40  ;;  %v564_v23 = vadd.f32 %v1735_v39, %v1738_v42  ;;  %v577_v24 = vadd.f32 %v1735_v39, %v1745_v49 }
 0x2e1   : > { %v1157_v31 = vpop.permute.xlu1 %1156  ;;  %v1167_v47 = vpop.permute.xlu0 %1166  ;;  %v1211_v2 = vsel %vm469_vm1, %v564_v23, %v1857_v4  ;;  %v1214_v5 = vsel %vm469_vm1, %v577_v24, %v1871_v13 }
 0x2e2   : > { %v1237_v51 = vsel %vm1235_vm3, %v1220_v44, %v1157_v31  ;;  %v1242_v50 = vsel %vm1235_vm3, %v1225_v45, %v1167_v47  ;;  %v1228_v42 = vsel %vm1218_vm2, %v1211_v2, %v1861_v6  ;;  %v1231_v25 = vsel %vm1218_vm2, %v1214_v5, %v1875_v9 }
 0x2e3   : > { %1253 = vst [vmem:[%s1884_s16 + $0x8] sm:$0xff] %v1237_v51  ;;  %1258 = vst [vmem:[%s1884_s16 + $0x30] sm:$0xff] %v1242_v50  ;;  %v1216_v6 = vsel %vm469_vm1, %v585_v27, %v1863_v7  ;;  %v1215_v9 = vsel %vm469_vm1, %v580_v29, %v1873_v14  ;;  %v1217_v7 = vsel %vm469_vm1, %v588_v41, %v1865_v8 }
 0x2e4   : > { %v1233_v46 = vsel %vm1218_vm2, %v1216_v6, %v1867_v11  ;;  %v1232_v30 = vsel %vm1218_vm2, %v1215_v9, %v1887_v17  ;;  %v1234_v11 = vsel %vm1218_vm2, %v1217_v7, %v1869_v12 }
 0x2e5   : > { %v1169_v33 = vpop.permute.xlu1 %1168  ;;  %v1163_v16 = vpop.permute.xlu0 %1162 }
 0x2e6   : > { %v1243_v18 = vsel %vm1235_vm3, %v1226_v57, %v1169_v33  ;;  %v1240_v56 = vsel %vm1235_vm3, %v1223_v15, %v1163_v16 }
 0x2e7   : > { %1259 = vst [vmem:[%s1884_s16 + $0x38] sm:$0xff] %v1243_v18  ;;  %1256 = vst [vmem:[%s1884_s16 + $0x20] sm:$0xff] %v1240_v56 }
 0x2e9   : > { %v1165_v36 = vpop.permute.xlu1 %1164  ;;  %v1175_v28 = vpop.permute.xlu0 %1174 }
 0x2ea   : > { %v1241_v60 = vsel %vm1235_vm3, %v1224_v35, %v1165_v36  ;;  %v1246_v63 = vsel %vm1235_vm3, %v1229_v61, %v1175_v28 }
 0x2eb   : > { %1257 = vst [vmem:[%s1884_s16 + $0x28] sm:$0xff] %v1241_v60  ;;  %1262 = vst [vmem:[%s1884_s16 + $0x50] sm:$0xff] %v1246_v63 }
 0x2ed   : > { %v1177_v38 = vpop.permute.xlu1 %1176  ;;  %v1171_v22 = vpop.permute.xlu0 %1170 }
 0x2ee   : > { %v1247_v0 = vsel %vm1235_vm3, %v1230_v37, %v1177_v38  ;;  %v1244_v3 = vsel %vm1235_vm3, %v1227_v21, %v1171_v22 }
 0x2ef   : > { %1263 = vst [vmem:[%s1884_s16 + $0x58] sm:$0xff] %v1247_v0  ;;  %1260 = vst [vmem:[%s1884_s16 + $0x40] sm:$0xff] %v1244_v3 }
 0x2f1   : > { %v1173_v49 = vpop.permute.xlu1 %1172  ;;  %v1179_v26 = vpop.permute.xlu0 %1178 }
 0x2f2   : > { %v1245_v4 = vsel %vm1235_vm3, %v1228_v42, %v1173_v49  ;;  %v1248_v13 = vsel %vm1235_vm3, %v1231_v25, %v1179_v26 }
 0x2f3   : > { %1261 = vst [vmem:[%s1884_s16 + $0x48] sm:$0xff] %v1245_v4  ;;  %1264 = vst [vmem:[%s1884_s16 + $0x60] sm:$0xff] %v1248_v13 }
 0x2f5   : > { %v1181_v55 = vpop.permute.xlu1 %1180  ;;  %v1183_v40 = vpop.permute.xlu0 %1182 }
 0x2f6   : > { %v1249_v43 = vsel %vm1235_vm3, %v1232_v30, %v1181_v55  ;;  %v1250_v44 = vsel %vm1235_vm3, %v1233_v46, %v1183_v40 }
 0x2f7   : > { %1265 = vst [vmem:[%s1884_s16 + $0x68] sm:$0xff] %v1249_v43  ;;  %1266 = vst [vmem:[%s1884_s16 + $0x70] sm:$0xff] %v1250_v44 }
 0x2f9   : > { %v1185_v14 = vpop.permute.xlu1 %1184 }
 0x2fa   : > { %v1251_v17 = vsel %vm1235_vm3, %v1234_v11, %v1185_v14 }
 0x2fb   : > { %1267 = vst [vmem:[%s1884_s16 + $0x78] sm:$0xff] %v1251_v17 }
 0x2fc PF: > { %s15_s18 = sadd.s32 1, %s1565_s18  }
 0x2fd   : > { %p12_p4 = scmp.ge.s32.totalorder %s15_s18, 4  }
 0x2ff   :  { %14 = sbr.rel (!%p12_p4) target bundleno = 1 (0x1), region = 70 }

</bundles_post_ra>
